<compile_context>
chip_gen: v7x
topology: tpu7x:2x2x1
jax: 0.10.0
libtpu: 0.0.40
codegen_flags: <defaults>
</compile_context>

<pallas_src>
import functools

import jax
import jax.numpy as jnp
import numpy as np
from jax import lax
from jax.experimental import pallas as pl
from jax.experimental.pallas import tpu as pltpu


# ----------------------------- Pallas kernel --------------------------------

def gat_kernel(h_ref, adj_ref, w_ref, wa_ref, out_ref, *, alpha, concat,
               mxu_dtype):
    """Fused GAT layer for ONE head (grid axis).  Everything resident in VMEM.

    h:   (N_pad, F_in)   node features, f32 (padded rows are zero)
    adj: (N_pad, N_pad)  adjacency, int8 (entry > 0 means edge; padding zero)
    w:   (F_in, F_pad)   this head's weight, mxu_dtype, feature axis zero-padded
    wa:  (2, F_in)       folded attention vectors [W@a1 ; W@a2], f32
    out: (N_pad, F_pad)  ELU(h') if concat else h'   (lane-dense f32 store)
    """
    h = h_ref[...]                                             # (N_pad, F_in) f32
    w = w_ref[...]                                             # (F_in, F_pad)

    # Wh = h @ W                                               (MXU, f32 acc)
    wh = jnp.dot(h.astype(mxu_dtype), w,
                 preferred_element_type=jnp.float32)           # (N_pad, F_pad)

    # attention logits from the folded vectors (contract F_in, not F_pad):
    #   e[i, j] = leakyrelu( h[i]·wa1 + h[j]·wa2 )
    wa1 = wa_ref[0:1, :]                                       # (1, F_in)
    wa2 = wa_ref[1:2, :]                                       # (1, F_in)
    s1 = jnp.sum(h * wa1, axis=1, keepdims=True)               # (N_pad, 1) VPU+XLU
    # row term produced directly as (1, N_pad): NT dot, no transpose of h.
    s2 = lax.dot_general(wa2, h, (((1,), (1,)), ((), ())),
                         preferred_element_type=jnp.float32)   # (1, N_pad)
    e = s1 + s2                                                # (N_pad, N_pad)

    # LeakyReLU fused under the adjacency mask (mask outermost, same -9e15 as
    # the torch module).  int8 adj -> f32 compare keeps the select layout clean.
    mask = adj_ref[...].astype(jnp.float32) > 0.0
    logits = jnp.where(mask, jnp.where(e >= 0, e, alpha * e),
                       jnp.float32(-9e15))

    # numerically stable row softmax with DEFERRED normalization: aggregate the
    # unnormalized weights on the MXU, rescale with an approx reciprocal (EUP).
    m = jnp.max(logits, axis=1, keepdims=True)
    p = jnp.exp(logits - m)                                    # (N_pad, N_pad) f32
    inv = pl.reciprocal(jnp.sum(p, axis=1, keepdims=True), approx=True)

    # h' = softmax(logits) @ Wh  ==  (p @ Wh) * inv            (MXU, f32 acc)
    h_prime = jnp.dot(p.astype(mxu_dtype), wh.astype(mxu_dtype),
                      preferred_element_type=jnp.float32) * inv

    if concat:
        # ELU(x) = x if x > 0 else exp(x) - 1   (ELU(0)=0 keeps padding zero)
        h_prime = jnp.where(h_prime > 0, h_prime, jnp.exp(h_prime) - 1.0)

    out_ref[...] = h_prime.astype(out_ref.dtype)


# ----------------------------- wrapper ---------------------------------------

def gat_forward(h, adj, W, a, *, alpha, concat=True, mxu_dtype=jnp.bfloat16):
    """Functional equivalent of GraphAttentionLayer.forward(h, adj).

    W: (F_in, F_out) or (H, F_in, F_out);  a: (2*F_out, 1) or (H, 2*F_out, 1).
    Multi-head parameters are batched into one pallas_call (parallel grid axis).
    """
    h = jnp.asarray(h, jnp.float32)
    W = jnp.asarray(W, jnp.float32)
    a = jnp.asarray(a, jnp.float32)

    squeeze_heads = (W.ndim == 2)
    if squeeze_heads:
        W, a = W[None], a[None]
    H, F_in, F_out = W.shape
    N = h.shape[0]

    # lane-dense feature axis and full-lane node axis (multiples of 128)
    F_pad = pl.cdiv(F_out, 128) * 128
    N_pad = pl.cdiv(N, 128) * 128

    # Fold the attention vector into W on the host (logits contract F_in).
    wa1 = jnp.einsum("hio,ho->hi", W, a[:, :F_out, 0])         # (H, F_in)
    wa2 = jnp.einsum("hio,ho->hi", W, a[:, F_out:, 0])         # (H, F_in)
    wa = jnp.stack([wa1, wa2], axis=1)                         # (H, 2, F_in) f32

    # zero-pad: padded weight columns / node rows contribute exactly 0
    W_p = jnp.zeros((H, F_in, F_pad), mxu_dtype).at[:, :, :F_out].set(
        W.astype(mxu_dtype))
    h_p = jnp.zeros((N_pad, F_in), jnp.float32).at[:N, :].set(h)
    adj_i8 = jnp.zeros((N_pad, N_pad), jnp.int8).at[:N, :N].set(
        (jnp.asarray(adj) > 0).astype(jnp.int8))

    out = pl.pallas_call(
        functools.partial(gat_kernel, alpha=float(alpha), concat=concat,
                          mxu_dtype=mxu_dtype),
        out_shape=jax.ShapeDtypeStruct((H, N_pad, F_pad), jnp.float32),
        grid=(H,),
        in_specs=[
            pl.BlockSpec((N_pad, F_in), lambda hd: (0, 0)),          # h (shared)
            pl.BlockSpec((N_pad, N_pad), lambda hd: (0, 0)),         # adj (shared)
            pl.BlockSpec((None, F_in, F_pad), lambda hd: (hd, 0, 0)),  # W[head]
            pl.BlockSpec((None, 2, F_in), lambda hd: (hd, 0, 0)),      # wa[head]
        ],
        out_specs=pl.BlockSpec((None, N_pad, F_pad), lambda hd: (hd, 0, 0)),
        compiler_params=pltpu.CompilerParams(
            dimension_semantics=("parallel",),
            vmem_limit_bytes=32 * 1024 * 1024),
    )(h_p, adj_i8, W_p, wa)

    out = out[:, :N, :F_out]           # drop padded nodes / feature columns
    if squeeze_heads:
        out = out[0]
    return out


# ----------------------------- pure-JAX reference ----------------------------

def gat_reference(h, adj, W, a, *, alpha, concat=True):
    F_out = W.shape[1]
    Wh = h @ W
    Wh1 = Wh @ a[:F_out, :]
    Wh2 = Wh @ a[F_out:, :]
    e = Wh1 + Wh2.T
    e = jnp.where(e >= 0, e, alpha * e)            # LeakyReLU(alpha)
    att = jnp.where(adj > 0, e, -9e15)
    att = jax.nn.softmax(att, axis=1)
    h_prime = att @ Wh
    if concat:
        h_prime = jnp.where(h_prime > 0, h_prime, jnp.exp(h_prime) - 1.0)  # ELU
    return h_prime


def xavier_uniform(key, shape, gain=1.414):
    fan_in, fan_out = shape[-2], shape[-1]
    limit = gain * np.sqrt(6.0 / (fan_in + fan_out))
    return jax.random.uniform(key, shape, jnp.float32, -limit, limit)


# ----------------------------- main -------------------------------------------

if __name__ == "__main__":
    N = 64                 # number of nodes
    in_features = 16
    out_features = 8
    n_heads = 4            # multi-head batch -> parallel grid axis
    alpha = 0.2            # LeakyReLU negative slope
    concat = True

    key = jax.random.PRNGKey(0)
    k_w, k_a, k_h, k_adj = jax.random.split(key, 4)

    W = xavier_uniform(k_w, (n_heads, in_features, out_features))
    a = xavier_uniform(k_a, (n_heads, 2 * out_features, 1))
    h = jax.random.normal(k_h, (N, in_features), dtype=jnp.float32)
    adj = (jax.random.uniform(k_adj, (N, N)) < 0.3).astype(jnp.float32)
    adj = jnp.maximum(adj, jnp.eye(N, dtype=jnp.float32))   # self loops

    ref = jnp.stack([gat_reference(h, adj, W[i], a[i], alpha=alpha,
                                   concat=concat) for i in range(n_heads)])

    # f32 MXU path: only the approx reciprocal loosens the tolerance.
    run_f32 = jax.jit(functools.partial(gat_forward, alpha=alpha, concat=concat,
                                        mxu_dtype=jnp.float32))
    out_f32 = run_f32(h, adj, W, a)
    jax.block_until_ready(out_f32)
    assert out_f32.shape == (n_heads, N, out_features)
    np.testing.assert_allclose(np.asarray(out_f32), np.asarray(ref),
                               rtol=1e-2, atol=1e-3)

    # bf16 MXU path (v6e/v7x recommendation): f32 accumulation + f32 elementwise.
    run_bf16 = jax.jit(functools.partial(gat_forward, alpha=alpha, concat=concat,
                                         mxu_dtype=jnp.bfloat16))
    out_bf16 = run_bf16(h, adj, W, a)
    jax.block_until_ready(out_bf16)
    np.testing.assert_allclose(np.asarray(out_bf16), np.asarray(ref),
                               rtol=5e-2, atol=5e-2)

    print("KERNEL_OK")
</pallas_src>

<mosaic_0001>
module attributes {stable_mosaic.version = 11 : i64} {
  func.func @gat_kernel(%arg0: i32, %arg1: memref<128x16xf32, #tpu.memory_space<vmem>>, %arg2: memref<128x128xi8, #tpu.memory_space<vmem>>, %arg3: memref<1x16x128xf32, #tpu.memory_space<vmem>>, %arg4: memref<1x2x16xf32, #tpu.memory_space<vmem>>, %arg5: memref<1x128x128xf32, #tpu.memory_space<vmem>>) attributes {dimension_semantics = [#tpu.dimension_semantics<parallel>], iteration_bounds = array<i64: 4>, scalar_prefetch = 0 : i64, scratch_operands = 0 : i64, tpu.core_type = #tpu.core_type<tc>, window_params = [{pipeline_mode = #tpu.pipeline_mode<synchronous>, transform_indices = @transform_0, window_bounds = array<i64: 128, 16>}, {pipeline_mode = #tpu.pipeline_mode<synchronous>, transform_indices = @transform_1, window_bounds = array<i64: 128, 128>}, {transform_indices = @transform_2, window_bounds = array<i64: 1, 16, 128>}, {transform_indices = @transform_3, window_bounds = array<i64: 1, 2, 16>}, {transform_indices = @transform_4, window_bounds = array<i64: 1, 128, 128>}]} {
    %c0 = arith.constant 0 : index
    %c0_0 = arith.constant 0 : index
    %0 = vector.load %arg1[%c0, %c0_0] : memref<128x16xf32, #tpu.memory_space<vmem>>, vector<128x16xf32>
    %c0_1 = arith.constant 0 : index
    %c0_2 = arith.constant 0 : index
    %c0_3 = arith.constant 0 : index
    %1 = vector.load %arg3[%c0_1, %c0_2, %c0_3] : memref<1x16x128xf32, #tpu.memory_space<vmem>>, vector<1x16x128xf32>
    %2 = vector.shape_cast %1 : vector<1x16x128xf32> to vector<16x128xf32>
    %cst = arith.constant dense<0.000000e+00> : vector<128x128xf32>
    %3 = tpu.matmul %0, %2, %cst {dimension_numbers = #tpu.dot_dimension_numbers<[1], [0], [0], [1], [0, 0, 1, 1], [], []>} : vector<128x16xf32>, vector<16x128xf32>, vector<128x128xf32> -> vector<128x128xf32>
    %c0_4 = arith.constant 0 : index
    %c0_5 = arith.constant 0 : index
    %c0_6 = arith.constant 0 : index
    %4 = vector.load %arg4[%c0_4, %c0_5, %c0_6] : memref<1x2x16xf32, #tpu.memory_space<vmem>>, vector<1x1x16xf32>
    %5 = vector.shape_cast %4 : vector<1x1x16xf32> to vector<1x16xf32>
    %c0_7 = arith.constant 0 : index
    %c1 = arith.constant 1 : index
    %c0_8 = arith.constant 0 : index
    %6 = vector.load %arg4[%c0_7, %c1, %c0_8] : memref<1x2x16xf32, #tpu.memory_space<vmem>>, vector<1x1x16xf32>
    %7 = vector.shape_cast %6 : vector<1x1x16xf32> to vector<1x16xf32>
    %8 = vector.broadcast %5 : vector<1x16xf32> to vector<128x16xf32>
    %9 = arith.mulf %0, %8 : vector<128x16xf32>
    %cst_9 = arith.constant dense<0.000000e+00> : vector<128xf32>
    %10 = vector.multi_reduction <add>, %9, %cst_9 [1] : vector<128x16xf32> to vector<128xf32>
    %11 = vector.shape_cast %10 : vector<128xf32> to vector<128x1xf32>
    %cst_10 = arith.constant dense<0.000000e+00> : vector<1x128xf32>
    %12 = tpu.matmul %7, %0, %cst_10 {dimension_numbers = #tpu.dot_dimension_numbers<[1], [1], [0], [0], [0, 0, 1, 0], [], []>} : vector<1x16xf32>, vector<128x16xf32>, vector<1x128xf32> -> vector<1x128xf32>
    %13 = vector.broadcast %11 : vector<128x1xf32> to vector<128x128xf32>
    %14 = vector.broadcast %12 : vector<1x128xf32> to vector<128x128xf32>
    %15 = arith.addf %13, %14 : vector<128x128xf32>
    %c0_11 = arith.constant 0 : index
    %c0_12 = arith.constant 0 : index
    %16 = vector.load %arg2[%c0_11, %c0_12] : memref<128x128xi8, #tpu.memory_space<vmem>>, vector<128x128xi8>
    %17 = arith.sitofp %16 : vector<128x128xi8> to vector<128x128xf32>
    %cst_13 = arith.constant 0.000000e+00 : f32
    %18 = vector.broadcast %cst_13 : f32 to vector<128x128xf32>
    %19 = arith.cmpf ogt, %17, %18 : vector<128x128xf32>
    %cst_14 = arith.constant 0.000000e+00 : f32
    %20 = vector.broadcast %cst_14 : f32 to vector<128x128xf32>
    %21 = arith.cmpf oge, %15, %20 : vector<128x128xf32>
    %cst_15 = arith.constant 2.000000e-01 : f32
    %22 = vector.broadcast %cst_15 : f32 to vector<128x128xf32>
    %23 = arith.mulf %22, %15 : vector<128x128xf32>
    %24 = arith.select %21, %15, %23 : vector<128x128xi1>, vector<128x128xf32>
    %cst_16 = arith.constant -9.000000e+15 : f32
    %25 = vector.broadcast %cst_16 : f32 to vector<128x128xf32>
    %26 = arith.select %19, %24, %25 : vector<128x128xi1>, vector<128x128xf32>
    %cst_17 = arith.constant dense<0xFF800000> : vector<128xf32>
    %27 = vector.multi_reduction <maximumf>, %26, %cst_17 [1] : vector<128x128xf32> to vector<128xf32>
    %28 = vector.shape_cast %27 : vector<128xf32> to vector<128x1xf32>
    %29 = vector.broadcast %28 : vector<128x1xf32> to vector<128x128xf32>
    %30 = arith.subf %26, %29 : vector<128x128xf32>
    %31 = math.exp %30 : vector<128x128xf32>
    %cst_18 = arith.constant dense<0.000000e+00> : vector<128xf32>
    %32 = vector.multi_reduction <add>, %31, %cst_18 [1] : vector<128x128xf32> to vector<128xf32>
    %33 = vector.shape_cast %32 : vector<128xf32> to vector<128x1xf32>
    %34 = tpu.reciprocal %33 {approx = true} : vector<128x1xf32> -> vector<128x1xf32>
    %cst_19 = arith.constant dense<0.000000e+00> : vector<128x128xf32>
    %35 = tpu.matmul %31, %3, %cst_19 {dimension_numbers = #tpu.dot_dimension_numbers<[1], [0], [0], [1], [0, 0, 1, 1], [], []>} : vector<128x128xf32>, vector<128x128xf32>, vector<128x128xf32> -> vector<128x128xf32>
    %36 = vector.broadcast %34 : vector<128x1xf32> to vector<128x128xf32>
    %37 = arith.mulf %35, %36 : vector<128x128xf32>
    %cst_20 = arith.constant 0.000000e+00 : f32
    %38 = vector.broadcast %cst_20 : f32 to vector<128x128xf32>
    %39 = arith.cmpf ogt, %37, %38 : vector<128x128xf32>
    %40 = math.exp %37 : vector<128x128xf32>
    %cst_21 = arith.constant 1.000000e+00 : f32
    %41 = vector.broadcast %cst_21 : f32 to vector<128x128xf32>
    %42 = arith.subf %40, %41 : vector<128x128xf32>
    %43 = arith.select %39, %37, %42 : vector<128x128xi1>, vector<128x128xf32>
    %c0_22 = arith.constant 0 : index
    %c0_23 = arith.constant 0 : index
    %c0_24 = arith.constant 0 : index
    %44 = vector.load %arg5[%c0_22, %c0_23, %c0_24] : memref<1x128x128xf32, #tpu.memory_space<vmem>>, vector<1x128x128xf32>
    %45 = vector.shape_cast %44 : vector<1x128x128xf32> to vector<128x128xf32>
    %46 = vector.shape_cast %43 : vector<128x128xf32> to vector<1x128x128xf32>
    tpu.vector_store %arg5[%c0_22, %c0_23, %c0_24], %46 {strides = array<i32>} : memref<1x128x128xf32, #tpu.memory_space<vmem>>, vector<1x128x128xf32>,
    return
  }
  func.func @transform_0(%arg0: i32) -> (i32, i32) {
    %c0_i32 = arith.constant 0 : i32
    %c0_i32_0 = arith.constant 0 : i32
    %c0_i32_1 = arith.constant 0 : i32
    return %c0_i32, %c0_i32_0 : i32, i32
  }
  func.func @transform_1(%arg0: i32) -> (i32, i32) {
    %c0_i32 = arith.constant 0 : i32
    %c0_i32_0 = arith.constant 0 : i32
    %c0_i32_1 = arith.constant 0 : i32
    return %c0_i32, %c0_i32_0 : i32, i32
  }
  func.func @transform_2(%arg0: i32) -> (i32, i32, i32) {
    %c0_i32 = arith.constant 0 : i32
    %c0_i32_0 = arith.constant 0 : i32
    %c0_i32_1 = arith.constant 0 : i32
    return %arg0, %c0_i32, %c0_i32_0 : i32, i32, i32
  }
  func.func @transform_3(%arg0: i32) -> (i32, i32, i32) {
    %c0_i32 = arith.constant 0 : i32
    %c0_i32_0 = arith.constant 0 : i32
    %c0_i32_1 = arith.constant 0 : i32
    return %arg0, %c0_i32, %c0_i32_0 : i32, i32, i32
  }
  func.func @transform_4(%arg0: i32) -> (i32, i32, i32) {
    %c0_i32 = arith.constant 0 : i32
    %c0_i32_0 = arith.constant 0 : i32
    %c0_i32_1 = arith.constant 0 : i32
    return %arg0, %c0_i32, %c0_i32_0 : i32, i32, i32
  }
}

</mosaic_0001>

<bundles_post_ra>
// kernel: gat_forward.1
= control target key start
LH: loop header
LB: loop body
LE: loop exit
PB: predicated region body
PF: predicated region fallthrough
CT: control target
= control target key end

     0   :  { %s1619_s15 = smov 0   ;;  %s1988_s0 = inlined_call_operand.vmem [shape: f32[128,16], index: 0, kind: input, shape index: {}]   ;;  %s1989_s1 = inlined_call_operand.vmem [shape: s8[128,128], index: 1, kind: input, shape index: {}]   ;;  %s1990_s2 = inlined_call_operand.vmem [shape: f32[4,16,128], index: 2, kind: input, shape index: {}]   ;;  %s1991_s3 = inlined_call_operand.vmem [shape: f32[4,2,16], index: 3, kind: input, shape index: {}]   ;;  %s1992_s4 = inlined_call_operand.vmem [shape: f32[4,128,128], index: 4, kind: output, shape index: {}]  }
   0x1 LB: > { %s1158_s16 = sadd.s32 4294967295, %s1589_s15   ;;  %p1162_p0 = scmp.ge.s32.totalorder %s1589_s15, 1  ;;  %s1589_s15 = sphi %s1619_s15, %s14_s15  }
   0x2   : > { %p171_p1 = scmp.lt.s32.totalorder %s1589_s15, 5 }
   0x4   : > { %p172_p2 = pnand %p1162_p0, %p171_p1 }
   0x5   : > { %v215_v0 = vld [vmem:[%s1988_s0] sm:$0xff] (!%p172_p2)  ;;  %v1633_v1 = vld [vmem:[%s1988_s0 + $0x8] sm:$0xff] (!%p172_p2)  ;;  %vm233_vm0 = vcmask (!%p172_p2), 130048   ;;  %v1591_v2 = vmov (!%p172_p2), 0.0|0.0   ;;  %p201_p3 = scmp.lt.s32.totalorder (!%p172_p2), %s1158_s16, 3  ;;  %vm1592_vm2 = vmmov (!%p172_p2), 0  }
   0x6   : > { %175 = sbr.rel (%p172_p2) target bundleno = 711 (0x2c7), region = 36  ;;  %1412 = vmatprep.subr.bf16.mxu1 (!%p172_p2), %v1591_v2  ;;  %v1413_v3 = vpack.c.bf16 (!%p172_p2), %v1633_v1, %v215_v0  ;;  %vm1639_vm1 = vmpackc.low (!%p172_p2), %vm233_vm0, %vm233_vm0  ;;  %1293 = vmatprep.mubr.msk.f32.mxu0 (!%p172_p2), %vm233_vm0, %v215_v0  ;;  %v1593_v5 = vmov (!%p172_p2), 0.0   ;;  %v217_v6 = vld [vmem:[%s1988_s0 + $0x10] sm:$0xff] (!%p172_p2)  ;;  %v1655_v7 = vld [vmem:[%s1988_s0 + $0x18] sm:$0xff] (!%p172_p2) }
   0x7   : > { %1349 = vmatprep.mubr.msk.f32.mxu1 (!%p172_p2), %vm1592_vm2, %v1593_v5  ;;  %v1417_v8 = vpack.c.bf16 (!%p172_p2), %v1655_v7, %v217_v6  ;;  %v1684_v16 = vld [vmem:[%s1988_s0 + $0x28] sm:$0xff] (!%p172_p2)  ;;  %v219_v17 = vld [vmem:[%s1988_s0 + $0x20] sm:$0xff] (!%p172_p2)  ;;  %v222_v25 = vld [vmem:[%s1988_s0 + $0x38] sm:$0xff] (!%p172_p2) }
   0x8   : > { %1415 = vmatpush3.bf16.xpose.msk.msra.mxu1 (!%p172_p2), %vm1639_vm1, %v1413_v3  ;;  %v1421_v24 = vpack.c.bf16 (!%p172_p2), %v1684_v16, %v219_v17  ;;  %v221_v26 = vld [vmem:[%s1988_s0 + $0x30] sm:$0xff] (!%p172_p2)  ;;  %v224_v32 = vld [vmem:[%s1988_s0 + $0x48] sm:$0xff] (!%p172_p2)  ;;  %v223_v33 = vld [vmem:[%s1988_s0 + $0x40] sm:$0xff] (!%p172_p2) }
   0x9   : > { %1416 = vmatprep.subr.bf16.mxu1 (!%p172_p2), %v1591_v2  ;;  %v1425_v38 = vpack.c.bf16 (!%p172_p2), %v222_v25, %v221_v26  ;;  %v226_v39 = vld [vmem:[%s1988_s0 + $0x58] sm:$0xff] (!%p172_p2)  ;;  %v225_v40 = vld [vmem:[%s1988_s0 + $0x50] sm:$0xff] (!%p172_p2)  ;;  %v228_v45 = vld [vmem:[%s1988_s0 + $0x68] sm:$0xff] (!%p172_p2)  ;;  %v1429_v51 = vpack.c.bf16 (!%p172_p2), %v224_v32, %v223_v33 }
   0xa   : > { %v227_v46 = vld [vmem:[%s1988_s0 + $0x60] sm:$0xff] (!%p172_p2)  ;;  %v230_v52 = vld [vmem:[%s1988_s0 + $0x78] sm:$0xff] (!%p172_p2)  ;;  %v229_v53 = vld [vmem:[%s1988_s0 + $0x70] sm:$0xff] (!%p172_p2)  ;;  %v1433_v60 = vpack.c.bf16 (!%p172_p2), %v226_v39, %v225_v40 }
   0xb   : > { %v1437_v61 = vpack.c.bf16 (!%p172_p2), %v228_v45, %v227_v46  ;;  %v1441_v62 = vpack.c.bf16 (!%p172_p2), %v230_v52, %v229_v53 }
   0xd   : > { %s1996_s16 = smov (!%p201_p3, %s1158_s16), 3 }
   0xe   : > { %s1165_s25 = sshll.u32 %s1996_s16, 1  ;;  %s1220_s29 = sshll.u32 %s1996_s16, 4 }
   0xf   : > { %s1661_s28 = scalar_lea.vmem %s1991_s3, %s1165_s25  ;;  %s205_s6 = scalar_lea.vmem %s1990_s2, %s1220_s29 }
  0x10   : > { %v1665_v9 = vld [vmem:[%s1661_s28] ss:$0 sm:$0xff]  ;;  %1419 = vmatpush3.bf16.xpose.msk.msra.mxu1 %vm1639_vm1, %v1417_v8  ;;  %v232_v23 = vld [vmem:[%s205_s6 + $0x8] sm:$0xff]  ;;  %v428_v63 = vld [vmem:[%s1661_s28 + $0x1] sm:$0x1]  ;;  %s1221_s17 = sshll.u32 %s1996_s16, 7 }
  0x11   : > { %v435_v10 = vmul.f32 %v1665_v9, %v217_v6  ;;  %v433_v11 = vmul.f32 %v1665_v9, %v215_v0  ;;  %v436_v12 = vmul.f32 %v1665_v9, %v1655_v7  ;;  %v434_v13 = vmul.f32 %v1665_v9, %v1633_v1  ;;  %1420 = vmatprep.subr.bf16.mxu1 %v1591_v2  ;;  %v231_v22 = vld [vmem:[%s205_s6] sm:$0xff]  ;;  %s1930_s20 = scalar_lea.vmem %s1992_s4, %s1221_s17 }
  0x12   : > { %v438_v19 = vmul.f32 %v1665_v9, %v1684_v16  ;;  %v437_v21 = vmul.f32 %v1665_v9, %v219_v17  ;;  %v440_v28 = vmul.f32 %v1665_v9, %v222_v25  ;;  %v1408_v29 = vpack.c.bf16 %v232_v23, %v231_v22 }
  0x13   : > { %v455_v14 = vsel %vm233_vm0, %v435_v10, 0.0  ;;  %v449_v15 = vsel %vm233_vm0, %v433_v11, 0.0  ;;  %v458_v18 = vsel %vm233_vm0, %v436_v12, 0.0  ;;  %v452_v20 = vsel %vm233_vm0, %v434_v13, 0.0 }
  0x14   : > { %456 = vadd.xlane.f32.xlu1 %v455_v14  ;;  %450 = vadd.xlane.f32.xlu0 %v449_v15  ;;  %v464_v27 = vsel %vm233_vm0, %v438_v19, 0.0  ;;  %v461_v30 = vsel %vm233_vm0, %v437_v21, 0.0  ;;  %v439_v31 = vmul.f32 %v1665_v9, %v221_v26  ;;  %v470_v34 = vsel %vm233_vm0, %v440_v28, 0.0 }
  0x15   : > { %1409 = vmatprep.subr.bf16.mxu0 %v1408_v29  ;;  %v442_v35 = vmul.f32 %v1665_v9, %v224_v32  ;;  %v441_v37 = vmul.f32 %v1665_v9, %v223_v33  ;;  %v444_v42 = vmul.f32 %v1665_v9, %v226_v39  ;;  %v443_v44 = vmul.f32 %v1665_v9, %v225_v40 }
  0x16   : > { %v467_v36 = vsel %vm233_vm0, %v439_v31, 0.0  ;;  %1411 = vmatpush3.bf16.msra.mxu0 %v1408_v29  ;;  %v446_v48 = vmul.f32 %v1665_v9, %v228_v45  ;;  %v445_v50 = vmul.f32 %v1665_v9, %v227_v46  ;;  %v448_v55 = vmul.f32 %v1665_v9, %v230_v52 }
  0x17   : > { %v476_v41 = vsel %vm233_vm0, %v442_v35, 0.0  ;;  %v473_v43 = vsel %vm233_vm0, %v441_v37, 0.0  ;;  %v482_v47 = vsel %vm233_vm0, %v444_v42, 0.0  ;;  %v479_v49 = vsel %vm233_vm0, %v443_v44, 0.0 }
  0x18   : > { %459 = vadd.xlane.f32.xlu1 %v458_v18  ;;  %453 = vadd.xlane.f32.xlu0 %v452_v20  ;;  %v488_v54 = vsel %vm233_vm0, %v446_v48, 0.0  ;;  %v485_v56 = vsel %vm233_vm0, %v445_v50, 0.0  ;;  %v447_v57 = vmul.f32 %v1665_v9, %v229_v53  ;;  %v494_v58 = vsel %vm233_vm0, %v448_v55, 0.0 }
  0x19   : > { %1423 = vmatpush3.bf16.xpose.msk.msra.mxu1 %vm1639_vm1, %v1421_v24  ;;  %1294 = vmatmul.mubr.msk.f32.vlgmr.msra.gmra.mrb[0].mxu0 %vm233_vm0, %v1633_v1  ;;  %v570_v22 = vlaneseq }
  0x1a   : > { %1424 = vmatprep.subr.bf16.mxu1 %v1591_v2  ;;  %1296 = vmatprep.mubr.msk.f32.mxu0 %vm233_vm0, %v217_v6  ;;  %v491_v59 = vsel %vm233_vm0, %v447_v57, 0.0 }
  0x1c   : > { %465 = vadd.xlane.f32.xlu1 %v464_v27  ;;  %462 = vadd.xlane.f32.xlu0 %v461_v30  ;;  %v591_v27 = vld [vmem:[%s1989_s1 + $0x8] sm:$0xff] }
  0x1d   : > { %1297 = vmatmul.mubr.msk.f32.gmra.mrb[2].mxu0 %vm233_vm0, %v1655_v7 }
  0x1e   : > { %1299 = vmatprep.mubr.msk.f32.mxu0 %vm233_vm0, %v219_v17 }
  0x20   : > { %471 = vadd.xlane.f32.xlu1 %v470_v34  ;;  %468 = vadd.xlane.f32.xlu0 %v467_v36  ;;  %v598_v36 = vunpack.c.0.s8 %v591_v27 }
  0x21   : > { %1427 = vmatpush3.bf16.xpose.msk.msra.mxu1 %vm1639_vm1, %v1425_v38  ;;  %1300 = vmatmul.mubr.msk.f32.gmra.mrb[4].mxu0 %vm233_vm0, %v1684_v16 }
  0x22   : > { %1428 = vmatprep.subr.bf16.mxu1 %v1591_v2  ;;  %1302 = vmatprep.mubr.msk.f32.mxu0 %vm233_vm0, %v221_v26  ;;  %v571_v26 = vshrl.u32 %v570_v22, 7 }
  0x24   : > { %477 = vadd.xlane.f32.xlu1 %v476_v41  ;;  %474 = vadd.xlane.f32.xlu0 %v473_v43 }
  0x25   : > { %1303 = vmatmul.mubr.msk.f32.gmra.mrb[6].mxu0 %vm233_vm0, %v222_v25  ;;  %v590_v25 = vld [vmem:[%s1989_s1] sm:$0xff] }
  0x26   : > { %1305 = vmatprep.mubr.msk.f32.mxu0 %vm233_vm0, %v223_v33  ;;  %v594_v28 = vunpack.c.0.s8 %v590_v25  ;;  %v595_v29 = vunpack.c.1.s8 %v590_v25  ;;  %v596_v30 = vunpack.c.2.s8 %v590_v25  ;;  %v597_v31 = vunpack.c.3.s8 %v590_v25 }
  0x27   : > { %v599_v33 = vunpack.c.1.s8 %v591_v27 }
  0x28   : > { %483 = vadd.xlane.f32.xlu1 %v482_v47  ;;  %480 = vadd.xlane.f32.xlu0 %v479_v49  ;;  %v610_v37 = vcvt.s32.f32 %v594_v28  ;;  %v611_v38 = vcvt.s32.f32 %v595_v29  ;;  %v613_v41 = vcvt.s32.f32 %v597_v31 }
  0x29   : > { %1431 = vmatpush3.bf16.xpose.msk.msra.mxu1 %vm1639_vm1, %v1429_v51  ;;  %1306 = vmatmul.mubr.msk.f32.gmra.mrb[8].mxu0 %vm233_vm0, %v224_v32  ;;  %v572_v32 = vsub.s32 0, %v571_v26  ;;  %v1793_v44 = vcvt.s32.f32 %v599_v33 }
  0x2a   : > { %1432 = vmatprep.subr.bf16.mxu1 %v1591_v2  ;;  %1308 = vmatprep.mubr.msk.f32.mxu0 %vm233_vm0, %v225_v40  ;;  %v612_v40 = vcvt.s32.f32 %v596_v30  ;;  %vm626_vm3 = vcmp.gt.f32.partialorder %v610_v37, 0.0  ;;  %vm627_vm4 = vcmp.gt.f32.partialorder %v611_v38, 0.0  ;;  %vm629_vm6 = vcmp.gt.f32.partialorder %v613_v41, 0.0 }
  0x2b   : > { %vm631_vm9 = vcmp.gt.f32.partialorder %v1793_v44, 0.0 }
  0x2c   : > { %489 = vadd.xlane.f32.xlu1 %v488_v54  ;;  %486 = vadd.xlane.f32.xlu0 %v485_v56  ;;  %vm628_vm5 = vcmp.gt.f32.partialorder %v612_v40, 0.0 }
  0x2d   : > { %1309 = vmatmul.mubr.msk.f32.gmra.mrb[10].mxu0 %vm233_vm0, %v226_v39 }
  0x2e   : > { %1311 = vmatprep.mubr.msk.f32.mxu0 %vm233_vm0, %v227_v46 }
  0x30   : > { %495 = vadd.xlane.f32.xlu1 %v494_v58  ;;  %492 = vadd.xlane.f32.xlu0 %v491_v59 }
  0x31   : > { %1435 = vmatpush3.bf16.xpose.msk.msra.mxu1 %vm1639_vm1, %v1433_v60  ;;  %1312 = vmatmul.mubr.msk.f32.gmra.mrb[12].mxu0 %vm233_vm0, %v228_v45  ;;  %v1795_v45 = vcvt.s32.f32 %v598_v36  ;;  %v601_v60 = vunpack.c.3.s8 %v591_v27 }
  0x32   : > { %1436 = vmatprep.subr.bf16.mxu1 %v1591_v2  ;;  %1314 = vmatprep.mubr.msk.f32.mxu0 %vm233_vm0, %v229_v53 }
  0x33   : > { %vm630_vm10 = vcmp.gt.f32.partialorder %v1795_v45, 0.0 }
  0x35   : > { %1315 = vmatmul.mubr.msk.f32.gmra.mrb[14].mxu0 %vm233_vm0, %v230_v52 }
  0x39   : > { %1439 = vmatpush3.bf16.xpose.msk.msra.mxu1 %vm1639_vm1, %v1437_v61  ;;  %v600_v61 = vunpack.c.2.s8 %v591_v27 }
  0x3a   : > { %1440 = vmatprep.subr.bf16.mxu1 %v1591_v2 }
  0x41   : > { %1443 = vmatpush3.bf16.xpose.msk.msra.mxu1 %vm1639_vm1, %v1441_v62  ;;  %v592_v62 = vld [vmem:[%s1989_s1 + $0x10] sm:$0xff] }
  0x48   : > { %1350 = vmatmul.mubr.msk.f32.vlgmr.msra.gmra.mrb[0].mxu1 %vm233_vm0, %v428_v63 }
  0xa1   : > { %v457_v15 = vpop.xlane.xlu1 %456  ;;  %v451_v17 = vpop.xlane.xlu0 %450 }
  0xa5   : > { %v460_v20 = vpop.xlane.xlu1 %459  ;;  %v454_v21 = vpop.xlane.xlu0 %453 }
  0xa9   : > { %v466_v23 = vpop.xlane.xlu1 %465  ;;  %v463_v24 = vpop.xlane.xlu0 %462 }
  0xad   : > { %v472_v34 = vpop.xlane.xlu1 %471  ;;  %v469_v35 = vpop.xlane.xlu0 %468 }
  0xb1   : > { %v478_v48 = vpop.xlane.xlu1 %477  ;;  %v475_v49 = vpop.xlane.xlu0 %474 }
  0xec   : > { %v1295_v0 = vpop.f32.mrb[0].mxu0 }
  0xed   : > { %v348_v1 = vpop.f32.mrb[1].mxu0 }
  0xee   : > { %v1444_v3 = vpack.c.bf16 %v1295_v0, %v348_v1 }
  0xf0   : > { %1445 = vmatprep.subr.bf16.mxu0 %v1444_v3  ;;  %v1298_v5 = vpop.f32.mrb[2].mxu0 }
  0xf1   : > { %1447 = vmatpush3.bf16.msra.mxu0 %v1444_v3  ;;  %v358_v6 = vpop.f32.mrb[3].mxu0  ;;  %v484_v3 = vpop.xlane.xlu1 %483 }
  0xf2   : > { %v1448_v7 = vpack.c.bf16 %v1298_v5, %v358_v6  ;;  %v481_v5 = vpop.xlane.xlu0 %480 }
  0xf4   : > { %v1301_v8 = vpop.f32.mrb[4].mxu0  ;;  %1449 = vmatprep.subr.bf16.mxu0 %v1448_v7 }
  0xf5   : > { %v368_v2 = vpop.f32.mrb[5].mxu0  ;;  %1451 = vmatpush3.bf16.msra.mxu0 %v1448_v7 }
  0xf6   : > { %v1452_v9 = vpack.c.bf16 %v1301_v8, %v368_v2  ;;  %v487_v25 = vpop.xlane.xlu0 %486 }
  0xf8   : > { %v1304_v10 = vpop.f32.mrb[6].mxu0  ;;  %1453 = vmatprep.subr.bf16.mxu0 %v1452_v9 }
  0xf9   : > { %v378_v4 = vpop.f32.mrb[7].mxu0  ;;  %1455 = vmatpush3.bf16.msra.mxu0 %v1452_v9 }
  0xfa   : > { %v1456_v11 = vpack.c.bf16 %v1304_v10, %v378_v4  ;;  %v603_v10 = vunpack.c.1.s8 %v592_v62  ;;  %v617_v4 = vcvt.s32.f32 %v601_v60 }
  0xfc   : > { %v1307_v12 = vpop.f32.mrb[8].mxu0  ;;  %1457 = vmatprep.subr.bf16.mxu0 %v1456_v11  ;;  %v619_v22 = vcvt.s32.f32 %v603_v10  ;;  %vm633_vm1 = vcmp.gt.f32.partialorder %v617_v4, 0.0 }
  0xfd   : > { %v388_v13 = vpop.f32.mrb[9].mxu0  ;;  %1459 = vmatpush3.bf16.msra.mxu0 %v1456_v11  ;;  %v616_v11 = vcvt.s32.f32 %v600_v61 }
  0xfe   : > { %v1460_v14 = vpack.c.bf16 %v1307_v12, %v388_v13  ;;  %v602_v12 = vunpack.c.0.s8 %v592_v62  ;;  %v605_v13 = vunpack.c.3.s8 %v592_v62 }
  0xff   : > { %vm632_vm2 = vcmp.gt.f32.partialorder %v616_v11, 0.0 }
 0x100   : > { %v1310_v16 = vpop.f32.mrb[10].mxu0  ;;  %1461 = vmatprep.subr.bf16.mxu0 %v1460_v14  ;;  %v618_v27 = vcvt.s32.f32 %v602_v12  ;;  %v621_v36 = vcvt.s32.f32 %v605_v13 }
 0x101   : > { %v398_v18 = vpop.f32.mrb[11].mxu0  ;;  %1463 = vmatpush3.bf16.msra.mxu0 %v1460_v14 }
 0x102   : > { %v1464_v19 = vpack.c.bf16 %v1310_v16, %v398_v18 }
 0x104   : > { %1465 = vmatprep.subr.bf16.mxu0 %v1464_v19 }
 0x105   : > { %1467 = vmatpush3.bf16.msra.mxu0 %v1464_v19 }
 0x11b   : > { %v566_v39 = vpop.f32.mrb[0].mxu1 }
 0x11c   : > { %v1791_v42 = vrot.slane %v566_v39, %v572_v32  ;;  %v1351_v43 = vpop.f32.mrb[1].mxu1  ;;  %v593_v32 = vld [vmem:[%s1989_s1 + $0x18] sm:$0xff] }
 0x11d   : > { %v607_v38 = vunpack.c.1.s8 %v593_v32  ;;  %v606_v39 = vunpack.c.0.s8 %v593_v32 }
 0x11e   : > { %v574_v46 = vadd.f32 %v1791_v42, %v451_v17  ;;  %v575_v47 = vadd.f32 %v1791_v42, %v454_v21  ;;  %v576_v50 = vadd.f32 %v1791_v42, %v457_v15  ;;  %v577_v51 = vadd.f32 %v1791_v42, %v460_v20 }
 0x11f   : > { %v579_v52 = vadd.f32 %v1791_v42, %v466_v23  ;;  %v578_v55 = vadd.f32 %v1791_v42, %v463_v24  ;;  %v581_v2 = vadd.f32 %v1791_v42, %v472_v34  ;;  %v580_v9 = vadd.f32 %v1791_v42, %v469_v35  ;;  %v490_v24 = vpop.xlane.xlu1 %489 }
 0x120   : > { %vm642_vm7 = vcmp.ge.f32.partialorder %v574_v46, 0.0  ;;  %vm643_vm8 = vcmp.ge.f32.partialorder %v575_v47, 0.0  ;;  %v658_v53 = vmul.f32 0.2, %v574_v46  ;;  %v659_v54 = vmul.f32 0.2, %v575_v47 }
 0x121   : > { %vm644_vm11 = vcmp.ge.f32.partialorder %v576_v50, 0.0  ;;  %v660_v56 = vmul.f32 0.2, %v576_v50  ;;  %vm645_vm12 = vcmp.ge.f32.partialorder %v577_v51, 0.0  ;;  %v661_v57 = vmul.f32 0.2, %v577_v51 }
 0x122   : > { %v674_v58 = vsel %vm642_vm7, %v574_v46, %v658_v53  ;;  %v675_v59 = vsel %vm643_vm8, %v575_v47, %v659_v54  ;;  %v663_v1 = vmul.f32 0.2, %v579_v52  ;;  %vm647_vm13 = vcmp.ge.f32.partialorder %v579_v52, 0.0  ;;  %v493_v46 = vpop.xlane.xlu0 %492 }
 0x123   : > { %v1809_v63 = vsel %vm626_vm3, %v674_v58, -9e+15  ;;  %v1812_v0 = vsel %vm627_vm4, %v675_v59, -9e+15  ;;  %v676_v6 = vsel %vm644_vm11, %v576_v50, %v660_v56  ;;  %v677_v7 = vsel %vm645_vm12, %v577_v51, %v661_v57  ;;  %v496_v45 = vpop.xlane.xlu1 %495 }
 0x124   : > { %706 = vmax.xlane.f32.xlu0 %v1809_v63  ;;  %708 = vmax.xlane.f32.xlu1 %v1812_v0  ;;  %v662_v8 = vmul.f32 0.2, %v578_v55  ;;  %vm646_vm14 = vcmp.ge.f32.partialorder %v578_v55, 0.0  ;;  %v1820_v14 = vsel %vm628_vm5, %v676_v6, -9e+15  ;;  %v679_v16 = vsel %vm647_vm13, %v579_v52, %v663_v1  ;;  %v1313_v6 = vpop.f32.mrb[12].mxu0 }
 0x125   : > { %v1823_v15 = vsel %vm629_vm6, %v677_v7, -9e+15  ;;  %v583_v17 = vadd.f32 %v1791_v42, %v478_v48  ;;  %v665_v19 = vmul.f32 0.2, %v581_v2  ;;  %v664_v20 = vmul.f32 0.2, %v580_v9 }
 0x126   : > { %v678_v18 = vsel %vm646_vm14, %v578_v55, %v662_v8  ;;  %v582_v21 = vadd.f32 %v1791_v42, %v475_v49  ;;  %vm649_vm15 = vcmp.ge.f32.partialorder %v581_v2, 0.0  ;;  %vm648_vm0 = vcmp.ge.f32.partialorder %v580_v9, 0.0  ;;  %v408_v10 = vpop.f32.mrb[13].mxu0 }
 0x127   : > { %v604_v23 = vunpack.c.2.s8 %v592_v62  ;;  %v1831_v26 = vsel %vm631_vm9, %v679_v16, -9e+15  ;;  %v1835_v28 = vsel %vm630_vm10, %v678_v18, -9e+15  ;;  %v667_v29 = vmul.f32 0.2, %v583_v17 }
 0x128   : > { %710 = vmax.xlane.f32.xlu0 %v1820_v14  ;;  %712 = vmax.xlane.f32.xlu1 %v1823_v15  ;;  %v585_v30 = vadd.f32 %v1791_v42, %v484_v3  ;;  %v584_v31 = vadd.f32 %v1791_v42, %v481_v5  ;;  %v681_v33 = vsel %vm649_vm15, %v581_v2, %v665_v19  ;;  %vm651_vm3 = vcmp.ge.f32.partialorder %v583_v17, 0.0  ;;  %v1316_v13 = vpop.f32.mrb[14].mxu0 }
 0x129   : > { %v680_v34 = vsel %vm648_vm0, %v580_v9, %v664_v20  ;;  %v666_v35 = vmul.f32 0.2, %v582_v21  ;;  %vm650_vm4 = vcmp.ge.f32.partialorder %v582_v21, 0.0  ;;  %v620_v37 = vcvt.s32.f32 %v604_v23  ;;  %v418_v18 = vpop.f32.mrb[15].mxu0 }
 0x12a   : > { %vm635_vm5 = vcmp.gt.f32.partialorder %v619_v22, 0.0  ;;  %vm634_vm6 = vcmp.gt.f32.partialorder %v618_v27, 0.0  ;;  %v1847_v40 = vsel %vm633_vm1, %v681_v33, -9e+15  ;;  %v1850_v41 = vsel %vm632_vm2, %v680_v34, -9e+15 }
 0x12b   : > { %v683_v43 = vsel %vm651_vm3, %v583_v17, %v667_v29  ;;  %v669_v44 = vmul.f32 0.2, %v585_v30  ;;  %v682_v47 = vsel %vm650_vm4, %v582_v21, %v666_v35  ;;  %v668_v48 = vmul.f32 0.2, %v584_v31 }
 0x12c   : > { %716 = vmax.xlane.f32.xlu1 %v1831_v26  ;;  %714 = vmax.xlane.f32.xlu0 %v1835_v28  ;;  %v587_v49 = vadd.f32 %v1791_v42, %v490_v24  ;;  %v586_v50 = vadd.f32 %v1791_v42, %v487_v25  ;;  %vm637_vm7 = vcmp.gt.f32.partialorder %v621_v36, 0.0  ;;  %vm653_vm8 = vcmp.ge.f32.partialorder %v585_v30, 0.0 }
 0x12d   : > { %vm636_vm9 = vcmp.gt.f32.partialorder %v620_v37, 0.0  ;;  %vm652_vm10 = vcmp.ge.f32.partialorder %v584_v31, 0.0  ;;  %v623_v51 = vcvt.s32.f32 %v607_v38  ;;  %v622_v52 = vcvt.s32.f32 %v606_v39 }
 0x12e   : > { %v609_v53 = vunpack.c.3.s8 %v593_v32  ;;  %v608_v54 = vunpack.c.2.s8 %v593_v32  ;;  %v589_v55 = vadd.f32 %v1791_v42, %v496_v45  ;;  %v588_v56 = vadd.f32 %v1791_v42, %v493_v46 }
 0x12f   : > { %v1859_v57 = vsel %vm635_vm5, %v683_v43, -9e+15  ;;  %v1862_v58 = vsel %vm634_vm6, %v682_v47, -9e+15  ;;  %v685_v59 = vsel %vm653_vm8, %v585_v30, %v669_v44  ;;  %v684_v60 = vsel %vm652_vm10, %v584_v31, %v668_v48 }
 0x130   : > { %720 = vmax.xlane.f32.xlu1 %v1847_v40  ;;  %718 = vmax.xlane.f32.xlu0 %v1850_v41  ;;  %v671_v61 = vmul.f32 0.2, %v587_v49  ;;  %v670_v62 = vmul.f32 0.2, %v586_v50  ;;  %vm655_vm11 = vcmp.ge.f32.partialorder %v587_v49, 0.0  ;;  %vm654_vm12 = vcmp.ge.f32.partialorder %v586_v50, 0.0 }
 0x131   : > { %vm639_vm13 = vcmp.gt.f32.partialorder %v623_v51, 0.0  ;;  %v625_v1 = vcvt.s32.f32 %v609_v53  ;;  %v1867_v42 = vsel %vm637_vm7, %v685_v59, -9e+15  ;;  %v1870_v3 = vsel %vm636_vm9, %v684_v60, -9e+15 }
 0x132   : > { %vm638_vm14 = vcmp.gt.f32.partialorder %v622_v52, 0.0  ;;  %v624_v5 = vcvt.s32.f32 %v608_v54  ;;  %v673_v7 = vmul.f32 0.2, %v589_v55  ;;  %v672_v8 = vmul.f32 0.2, %v588_v56 }
 0x133   : > { %v687_v2 = vsel %vm655_vm11, %v587_v49, %v671_v61  ;;  %v686_v9 = vsel %vm654_vm12, %v586_v50, %v670_v62  ;;  %vm657_vm15 = vcmp.ge.f32.partialorder %v589_v55, 0.0  ;;  %vm656_vm0 = vcmp.ge.f32.partialorder %v588_v56, 0.0 }
 0x134   : > { %724 = vmax.xlane.f32.xlu1 %v1859_v57  ;;  %722 = vmax.xlane.f32.xlu0 %v1862_v58  ;;  %v1468_v4 = vpack.c.bf16 %v1313_v6, %v408_v10  ;;  %v1875_v11 = vsel %vm639_vm13, %v687_v2, -9e+15  ;;  %v1877_v12 = vsel %vm638_vm14, %v686_v9, -9e+15  ;;  %vm641_vm1 = vcmp.gt.f32.partialorder %v625_v1, 0.0 }
 0x135   : > { %v689_v16 = vsel %vm657_vm15, %v589_v55, %v673_v7  ;;  %vm640_vm2 = vcmp.gt.f32.partialorder %v624_v5, 0.0  ;;  %v688_v17 = vsel %vm656_vm0, %v588_v56, %v672_v8  ;;  %v1472_v19 = vpack.c.bf16 %v1316_v13, %v418_v18 }
 0x136   : > { %1469 = vmatprep.subr.bf16.mxu0 %v1468_v4  ;;  %v1881_v20 = vsel %vm641_vm1, %v689_v16, -9e+15  ;;  %v1883_v21 = vsel %vm640_vm2, %v688_v17, -9e+15 }
 0x137   : > { %1471 = vmatpush3.bf16.msra.mxu0 %v1468_v4 }
 0x138   : > { %728 = vmax.xlane.f32.xlu1 %v1867_v42  ;;  %726 = vmax.xlane.f32.xlu0 %v1870_v3 }
 0x139   : > { %1473 = vmatprep.subr.bf16.mxu0 %v1472_v19 }
 0x13b   : > { %1475 = vmatpush3.bf16.msra.mxu0 %v1472_v19 }
 0x13c   : > { %732 = vmax.xlane.f32.xlu1 %v1875_v11  ;;  %730 = vmax.xlane.f32.xlu0 %v1877_v12 }
 0x140   : > { %736 = vmax.xlane.f32.xlu1 %v1881_v20  ;;  %734 = vmax.xlane.f32.xlu0 %v1883_v21 }
 0x1b1   : > { %v709_v22 = vpop.xlane.xlu1 %708  ;;  %v707_v23 = vpop.xlane.xlu0 %706 }
 0x1b2   : > { %v739_v24 = vsub.f32 %v1812_v0, %v709_v22  ;;  %v738_v25 = vsub.f32 %v1809_v63, %v707_v23 }
 0x1b4   : > { %v756_v27 = vmul.f32 1.442695, %v739_v24  ;;  %v754_v29 = vmul.f32 1.442695, %v738_v25 }
 0x1b5   : > { %v713_v30 = vpop.xlane.xlu1 %712  ;;  %v711_v31 = vpop.xlane.xlu0 %710 }
 0x1b6   : > { %1487 = vpow2.f32 %v756_v27  ;;  %v741_v32 = vsub.f32 %v1823_v15, %v713_v30  ;;  %v740_v33 = vsub.f32 %v1820_v14, %v711_v31 }
 0x1b7   : > { %1489 = vpow2.f32 %v754_v29 }
 0x1b8   : > { %v760_v34 = vmul.f32 1.442695, %v741_v32  ;;  %v758_v35 = vmul.f32 1.442695, %v740_v33 }
 0x1b9   : > { %v717_v36 = vpop.xlane.xlu1 %716  ;;  %v715_v37 = vpop.xlane.xlu0 %714 }
 0x1ba   : > { %1491 = vpow2.f32 %v760_v34  ;;  %v743_v38 = vsub.f32 %v1831_v26, %v717_v36  ;;  %v742_v0 = vsub.f32 %v1835_v28, %v715_v37 }
 0x1bb   : > { %1493 = vpow2.f32 %v758_v35 }
 0x1bc   : > { %v764_v63 = vmul.f32 1.442695, %v743_v38  ;;  %v762_v39 = vmul.f32 1.442695, %v742_v0 }
 0x1bd   : > { %v721_v43 = vpop.xlane.xlu1 %720  ;;  %v719_v44 = vpop.xlane.xlu0 %718 }
 0x1be   : > { %1495 = vpow2.f32 %v764_v63  ;;  %v745_v15 = vsub.f32 %v1847_v40, %v721_v43  ;;  %v744_v14 = vsub.f32 %v1850_v41, %v719_v44 }
 0x1bf   : > { %1497 = vpow2.f32 %v762_v39 }
 0x1c0   : > { %v1488_v45 = vpop.eup %1487  ;;  %v768_v46 = vmul.f32 1.442695, %v745_v15  ;;  %v766_v47 = vmul.f32 1.442695, %v744_v14 }
 0x1c1   : > { %v1490_v48 = vpop.eup %1489  ;;  %788 = vadd.xlane.f32.xlu1 %v1488_v45  ;;  %v725_v49 = vpop.xlane.xlu1 %724 }
 0x1c2   : > { %v723_v26 = vpop.xlane.xlu0 %722  ;;  %1499 = vpow2.f32 %v768_v46  ;;  %v747_v28 = vsub.f32 %v1859_v57, %v725_v49  ;;  %786 = vadd.xlane.f32.xlu0 %v1490_v48  ;;  %1384 = vmatprep.mubr.f32.mxu0 %v1490_v48 }
 0x1c3   : > { %v746_v50 = vsub.f32 %v1862_v58, %v723_v26  ;;  %1501 = vpow2.f32 %v766_v47  ;;  %1385 = vmatmul.mubr.f32.vlgmr.msra.gmra.mrb[16].mxu0 %v1488_v45 }
 0x1c4   : > { %v1492_v40 = vpop.eup %1491  ;;  %v772_v51 = vmul.f32 1.442695, %v747_v28 }
 0x1c5   : > { %v770_v41 = vmul.f32 1.442695, %v746_v50  ;;  %v1494_v52 = vpop.eup %1493  ;;  %792 = vadd.xlane.f32.xlu1 %v1492_v40  ;;  %v729_v53 = vpop.xlane.xlu1 %728 }
 0x1c6   : > { %v727_v54 = vpop.xlane.xlu0 %726  ;;  %1503 = vpow2.f32 %v772_v51  ;;  %v749_v55 = vsub.f32 %v1867_v42, %v729_v53  ;;  %790 = vadd.xlane.f32.xlu0 %v1494_v52  ;;  %1387 = vmatprep.mubr.f32.mxu0 %v1494_v52 }
 0x1c7   : > { %v748_v56 = vsub.f32 %v1870_v3, %v727_v54  ;;  %1505 = vpow2.f32 %v770_v41  ;;  %1388 = vmatmul.mubr.f32.gmra.mrb[18].mxu0 %v1492_v40 }
 0x1c8   : > { %v1496_v57 = vpop.eup %1495  ;;  %v776_v58 = vmul.f32 1.442695, %v749_v55 }
 0x1c9   : > { %v774_v59 = vmul.f32 1.442695, %v748_v56  ;;  %v1498_v60 = vpop.eup %1497  ;;  %796 = vadd.xlane.f32.xlu1 %v1496_v57  ;;  %v733_v61 = vpop.xlane.xlu1 %732 }
 0x1ca   : > { %v731_v62 = vpop.xlane.xlu0 %730  ;;  %1507 = vpow2.f32 %v776_v58  ;;  %v751_v1 = vsub.f32 %v1875_v11, %v733_v61  ;;  %794 = vadd.xlane.f32.xlu0 %v1498_v60  ;;  %1390 = vmatprep.mubr.f32.mxu0 %v1498_v60 }
 0x1cb   : > { %v750_v5 = vsub.f32 %v1877_v12, %v731_v62  ;;  %1509 = vpow2.f32 %v774_v59  ;;  %1391 = vmatmul.mubr.f32.gmra.mrb[20].mxu0 %v1496_v57 }
 0x1cc   : > { %v1500_v42 = vpop.eup %1499  ;;  %v780_v3 = vmul.f32 1.442695, %v751_v1 }
 0x1cd   : > { %v778_v6 = vmul.f32 1.442695, %v750_v5  ;;  %v1502_v7 = vpop.eup %1501  ;;  %800 = vadd.xlane.f32.xlu1 %v1500_v42  ;;  %v737_v8 = vpop.xlane.xlu1 %736 }
 0x1ce   : > { %v735_v2 = vpop.xlane.xlu0 %734  ;;  %1511 = vpow2.f32 %v780_v3  ;;  %v753_v9 = vsub.f32 %v1881_v20, %v737_v8  ;;  %798 = vadd.xlane.f32.xlu0 %v1502_v7  ;;  %1393 = vmatprep.mubr.f32.mxu0 %v1502_v7 }
 0x1cf   : > { %v752_v10 = vsub.f32 %v1883_v21, %v735_v2  ;;  %1513 = vpow2.f32 %v778_v6  ;;  %1394 = vmatmul.mubr.f32.gmra.mrb[22].mxu0 %v1500_v42 }
 0x1d0   : > { %v1504_v4 = vpop.eup %1503  ;;  %v784_v11 = vmul.f32 1.442695, %v753_v9 }
 0x1d1   : > { %v782_v12 = vmul.f32 1.442695, %v752_v10  ;;  %v1506_v13 = vpop.eup %1505  ;;  %804 = vadd.xlane.f32.xlu1 %v1504_v4 }
 0x1d2   : > { %1515 = vpow2.f32 %v784_v11  ;;  %802 = vadd.xlane.f32.xlu0 %v1506_v13  ;;  %1396 = vmatprep.mubr.f32.mxu0 %v1506_v13 }
 0x1d3   : > { %1517 = vpow2.f32 %v782_v12  ;;  %1397 = vmatmul.mubr.f32.gmra.mrb[24].mxu0 %v1504_v4 }
 0x1d4   : > { %v1508_v16 = vpop.eup %1507 }
 0x1d5   : > { %v1510_v17 = vpop.eup %1509  ;;  %808 = vadd.xlane.f32.xlu1 %v1508_v16 }
 0x1d6   : > { %806 = vadd.xlane.f32.xlu0 %v1510_v17  ;;  %1399 = vmatprep.mubr.f32.mxu0 %v1510_v17 }
 0x1d7   : > { %1400 = vmatmul.mubr.f32.gmra.mrb[26].mxu0 %v1508_v16 }
 0x1d8   : > { %v1512_v18 = vpop.eup %1511 }
 0x1d9   : > { %v1514_v19 = vpop.eup %1513  ;;  %812 = vadd.xlane.f32.xlu1 %v1512_v18 }
 0x1da   : > { %810 = vadd.xlane.f32.xlu0 %v1514_v19  ;;  %1402 = vmatprep.mubr.f32.mxu0 %v1514_v19 }
 0x1db   : > { %1403 = vmatmul.mubr.f32.gmra.mrb[28].mxu0 %v1512_v18 }
 0x1dc   : > { %v1516_v20 = vpop.eup %1515 }
 0x1dd   : > { %v1518_v21 = vpop.eup %1517  ;;  %816 = vadd.xlane.f32.xlu1 %v1516_v20 }
 0x1de   : > { %814 = vadd.xlane.f32.xlu0 %v1518_v21  ;;  %1405 = vmatprep.mubr.f32.mxu0 %v1518_v21 }
 0x1df   : > { %1406 = vmatmul.mubr.f32.gmra.mrb[30].mxu0 %v1516_v20 }
 0x24e   : > { %v789_v22 = vpop.xlane.xlu1 %788 }
 0x24f   : > { %v787_v23 = vpop.xlane.xlu0 %786  ;;  %1519 = vrcp.f32 %v789_v22 }
 0x250   : > { %1521 = vrcp.f32 %v787_v23 }
 0x252   : > { %v793_v24 = vpop.xlane.xlu1 %792 }
 0x253   : > { %v791_v25 = vpop.xlane.xlu0 %790  ;;  %1523 = vrcp.f32 %v793_v24 }
 0x254   : > { %1525 = vrcp.f32 %v791_v25 }
 0x256   : > { %v797_v27 = vpop.xlane.xlu1 %796 }
 0x257   : > { %v795_v29 = vpop.xlane.xlu0 %794  ;;  %1527 = vrcp.f32 %v797_v27 }
 0x258   : > { %1529 = vrcp.f32 %v795_v29 }
 0x259   : > { %v1520_v34 = vpop.eup %1519 }
 0x25a   : > { %v801_v30 = vpop.xlane.xlu1 %800  ;;  %v1522_v36 = vpop.eup %1521 }
 0x25b   : > { %v799_v31 = vpop.xlane.xlu0 %798  ;;  %1531 = vrcp.f32 %v801_v30 }
 0x25c   : > { %1533 = vrcp.f32 %v799_v31 }
 0x25d   : > { %v1524_v43 = vpop.eup %1523 }
 0x25e   : > { %v805_v32 = vpop.xlane.xlu1 %804  ;;  %v1526_v45 = vpop.eup %1525 }
 0x25f   : > { %v803_v33 = vpop.xlane.xlu0 %802  ;;  %1535 = vrcp.f32 %v805_v32 }
 0x261   : > { %v1528_v28 = vpop.eup %1527 }
 0x262   : > { %v809_v37 = vpop.xlane.xlu1 %808  ;;  %v1530_v51 = vpop.eup %1529 }
 0x263   : > { %v807_v44 = vpop.xlane.xlu0 %806 }
 0x265   : > { %v1532_v56 = vpop.eup %1531 }
 0x266   : > { %v813_v49 = vpop.xlane.xlu1 %812  ;;  %v1534_v59 = vpop.eup %1533 }
 0x267   : > { %v811_v53 = vpop.xlane.xlu0 %810 }
 0x269   : > { %v1536_v1 = vpop.eup %1535 }
 0x26a   : > { %v817_v60 = vpop.xlane.xlu1 %816 }
 0x26b   : > { %v815_v7 = vpop.xlane.xlu0 %814 }
 0x296   : > { %v1386_v35 = vpop.f32.mrb[16].mxu0 }
 0x297   : > { %v1903_v38 = vmul.f32 %v1520_v34, %v1386_v35  ;;  %v900_v0 = vpop.f32.mrb[17].mxu0 }
 0x298   : > { %v1905_v63 = vmul.f32 %v1522_v36, %v900_v0 }
 0x299   : > { %v1013_v39 = vmul.f32 1.442695, %v1903_v38  ;;  %vm996_vm3 = vcmp.gt.f32.partialorder %v1903_v38, 0.0 }
 0x29a   : > { %v1011_v15 = vmul.f32 1.442695, %v1905_v63  ;;  %v1389_v14 = vpop.f32.mrb[18].mxu0  ;;  %vm995_vm4 = vcmp.gt.f32.partialorder %v1905_v63, 0.0 }
 0x29b   : > { %1537 = vpow2.f32 %v1013_v39  ;;  %v1909_v46 = vmul.f32 %v1524_v43, %v1389_v14  ;;  %v910_v47 = vpop.f32.mrb[19].mxu0 }
 0x29c   : > { %1539 = vpow2.f32 %v1011_v15  ;;  %v1911_v48 = vmul.f32 %v1526_v45, %v910_v47 }
 0x29d   : > { %1541 = vrcp.f32 %v803_v33  ;;  %v1017_v26 = vmul.f32 1.442695, %v1909_v46  ;;  %vm998_vm5 = vcmp.gt.f32.partialorder %v1909_v46, 0.0 }
 0x29e   : > { %1543 = vrcp.f32 %v809_v37  ;;  %v1015_v50 = vmul.f32 1.442695, %v1911_v48  ;;  %v1392_v40 = vpop.f32.mrb[20].mxu0  ;;  %vm997_vm6 = vcmp.gt.f32.partialorder %v1911_v48, 0.0 }
 0x29f   : > { %1545 = vpow2.f32 %v1017_v26  ;;  %v1915_v41 = vmul.f32 %v1528_v28, %v1392_v40  ;;  %v920_v52 = vpop.f32.mrb[21].mxu0 }
 0x2a0   : > { %1547 = vpow2.f32 %v1015_v50  ;;  %v1917_v54 = vmul.f32 %v1530_v51, %v920_v52 }
 0x2a1   : > { %1549 = vrcp.f32 %v807_v44  ;;  %v1021_v55 = vmul.f32 1.442695, %v1915_v41  ;;  %vm1000_vm7 = vcmp.gt.f32.partialorder %v1915_v41, 0.0 }
 0x2a2   : > { %1551 = vrcp.f32 %v813_v49  ;;  %v1019_v57 = vmul.f32 1.442695, %v1917_v54  ;;  %v1395_v58 = vpop.f32.mrb[22].mxu0  ;;  %vm999_vm8 = vcmp.gt.f32.partialorder %v1917_v54, 0.0 }
 0x2a3   : > { %1553 = vpow2.f32 %v1021_v55  ;;  %v1922_v61 = vmul.f32 %v1532_v56, %v1395_v58  ;;  %v930_v62 = vpop.f32.mrb[23].mxu0 }
 0x2a4   : > { %1555 = vpow2.f32 %v1019_v57  ;;  %v1924_v5 = vmul.f32 %v1534_v59, %v930_v62 }
 0x2a5   : > { %v1538_v42 = vpop.eup %1537  ;;  %1557 = vrcp.f32 %v811_v53  ;;  %v1025_v3 = vmul.f32 1.442695, %v1922_v61  ;;  %vm1002_vm9 = vcmp.gt.f32.partialorder %v1922_v61, 0.0 }
 0x2a6   : > { %v1540_v6 = vpop.eup %1539  ;;  %1559 = vrcp.f32 %v817_v60  ;;  %v1203_v8 = vadd.f32 -1.0, %v1538_v42  ;;  %v1023_v2 = vmul.f32 1.442695, %v1924_v5  ;;  %v1398_v9 = vpop.f32.mrb[24].mxu0  ;;  %vm1001_vm10 = vcmp.gt.f32.partialorder %v1924_v5, 0.0 }
 0x2a7   : > { %v1542_v10 = vpop.eup %1541  ;;  %v1202_v4 = vadd.f32 -1.0, %v1540_v6  ;;  %1561 = vpow2.f32 %v1025_v3  ;;  %v1934_v11 = vmul.f32 %v1536_v1, %v1398_v9  ;;  %v940_v12 = vpop.f32.mrb[25].mxu0 }
 0x2a8   : > { %v1544_v13 = vpop.eup %1543  ;;  %v1060_v16 = vsel %vm996_vm3, %v1903_v38, %v1203_v8  ;;  %1563 = vpow2.f32 %v1023_v2  ;;  %v1938_v17 = vmul.f32 %v1542_v10, %v940_v12 }
 0x2a9   : > { %v1546_v18 = vpop.eup %1545  ;;  %1565 = vrcp.f32 %v815_v7  ;;  %1076 = vst [vmem:[%s1930_s20 + $0x8] sm:$0xff] %v1060_v16  ;;  %v1059_v19 = vsel %vm995_vm4, %v1905_v63, %v1202_v4  ;;  %v1029_v20 = vmul.f32 1.442695, %v1934_v11  ;;  %vm1004_vm11 = vcmp.gt.f32.partialorder %v1934_v11, 0.0 }
 0x2aa   : > { %v1548_v21 = vpop.eup %1547  ;;  %1075 = vst [vmem:[%s1930_s20] sm:$0xff] %v1059_v19  ;;  %v1205_v22 = vadd.f32 -1.0, %v1546_v18  ;;  %v1027_v23 = vmul.f32 1.442695, %v1938_v17  ;;  %v1401_v24 = vpop.f32.mrb[26].mxu0  ;;  %vm1003_vm12 = vcmp.gt.f32.partialorder %v1938_v17, 0.0 }
 0x2ab   : > { %v1550_v25 = vpop.eup %1549  ;;  %v1204_v27 = vadd.f32 -1.0, %v1548_v21  ;;  %1567 = vpow2.f32 %v1029_v20  ;;  %v1946_v29 = vmul.f32 %v1544_v13, %v1401_v24  ;;  %v950_v30 = vpop.f32.mrb[27].mxu0 }
 0x2ac   : > { %v1552_v31 = vpop.eup %1551  ;;  %v1062_v32 = vsel %vm998_vm5, %v1909_v46, %v1205_v22  ;;  %1569 = vpow2.f32 %v1027_v23  ;;  %v1950_v33 = vmul.f32 %v1550_v25, %v950_v30 }
 0x2ad   : > { %v1554_v34 = vpop.eup %1553  ;;  %1078 = vst [vmem:[%s1930_s20 + $0x18] sm:$0xff] %v1062_v32  ;;  %v1061_v35 = vsel %vm997_vm6, %v1911_v48, %v1204_v27  ;;  %v1033_v36 = vmul.f32 1.442695, %v1946_v29  ;;  %vm1006_vm13 = vcmp.gt.f32.partialorder %v1946_v29, 0.0 }
 0x2ae   : > { %v1556_v37 = vpop.eup %1555  ;;  %1077 = vst [vmem:[%s1930_s20 + $0x10] sm:$0xff] %v1061_v35  ;;  %v1207_v38 = vadd.f32 -1.0, %v1554_v34  ;;  %v1031_v0 = vmul.f32 1.442695, %v1950_v33  ;;  %v1404_v63 = vpop.f32.mrb[28].mxu0  ;;  %vm1005_vm14 = vcmp.gt.f32.partialorder %v1950_v33, 0.0 }
 0x2af   : > { %v1558_v39 = vpop.eup %1557  ;;  %v1206_v43 = vadd.f32 -1.0, %v1556_v37  ;;  %1571 = vpow2.f32 %v1033_v36  ;;  %v992_v44 = vmul.f32 %v1552_v31, %v1404_v63  ;;  %v960_v15 = vpop.f32.mrb[29].mxu0 }
 0x2b0   : > { %v1560_v14 = vpop.eup %1559  ;;  %v1064_v45 = vsel %vm1000_vm7, %v1915_v41, %v1207_v38  ;;  %1573 = vpow2.f32 %v1031_v0  ;;  %v991_v46 = vmul.f32 %v1558_v39, %v960_v15 }
 0x2b1   : > { %v1562_v47 = vpop.eup %1561  ;;  %1080 = vst [vmem:[%s1930_s20 + $0x28] sm:$0xff] %v1064_v45  ;;  %v1063_v48 = vsel %vm999_vm8, %v1917_v54, %v1206_v43  ;;  %v1037_v49 = vmul.f32 1.442695, %v992_v44  ;;  %vm1008_vm15 = vcmp.gt.f32.partialorder %v992_v44, 0.0 }
 0x2b2   : > { %v1564_v26 = vpop.eup %1563  ;;  %1079 = vst [vmem:[%s1930_s20 + $0x20] sm:$0xff] %v1063_v48  ;;  %v1209_v28 = vadd.f32 -1.0, %v1562_v47  ;;  %v1035_v50 = vmul.f32 1.442695, %v991_v46  ;;  %v1407_v40 = vpop.f32.mrb[30].mxu0  ;;  %vm1007_vm0 = vcmp.gt.f32.partialorder %v991_v46, 0.0 }
 0x2b3   : > { %v1566_v51 = vpop.eup %1565  ;;  %v1208_v41 = vadd.f32 -1.0, %v1564_v26  ;;  %1575 = vpow2.f32 %v1037_v49  ;;  %v994_v52 = vmul.f32 %v1560_v14, %v1407_v40  ;;  %v970_v53 = vpop.f32.mrb[31].mxu0 }
 0x2b4   : > { %v1066_v55 = vsel %vm1002_vm9, %v1922_v61, %v1209_v28  ;;  %1577 = vpow2.f32 %v1035_v50  ;;  %v993_v54 = vmul.f32 %v1566_v51, %v970_v53 }
 0x2b5   : > { %v1568_v56 = vpop.eup %1567  ;;  %1082 = vst [vmem:[%s1930_s20 + $0x38] sm:$0xff] %v1066_v55  ;;  %v1065_v57 = vsel %vm1001_vm10, %v1924_v5, %v1208_v41  ;;  %v1041_v58 = vmul.f32 1.442695, %v994_v52  ;;  %vm1010_vm1 = vcmp.gt.f32.partialorder %v994_v52, 0.0 }
 0x2b6   : > { %v1570_v59 = vpop.eup %1569  ;;  %1081 = vst [vmem:[%s1930_s20 + $0x30] sm:$0xff] %v1065_v57  ;;  %v1211_v60 = vadd.f32 -1.0, %v1568_v56  ;;  %v1039_v62 = vmul.f32 1.442695, %v993_v54  ;;  %vm1009_vm2 = vcmp.gt.f32.partialorder %v993_v54, 0.0 }
 0x2b7   : > { %v1210_v1 = vadd.f32 -1.0, %v1570_v59  ;;  %1579 = vpow2.f32 %v1041_v58 }
 0x2b8   : > { %v1068_v61 = vsel %vm1004_vm11, %v1934_v11, %v1211_v60  ;;  %1581 = vpow2.f32 %v1039_v62 }
 0x2b9   : > { %v1572_v42 = vpop.eup %1571  ;;  %1084 = vst [vmem:[%s1930_s20 + $0x48] sm:$0xff] %v1068_v61  ;;  %v1067_v5 = vsel %vm1003_vm12, %v1938_v17, %v1210_v1 }
 0x2ba   : > { %v1574_v3 = vpop.eup %1573  ;;  %1083 = vst [vmem:[%s1930_s20 + $0x40] sm:$0xff] %v1067_v5  ;;  %v1213_v6 = vadd.f32 -1.0, %v1572_v42 }
 0x2bb   : > { %v1212_v7 = vadd.f32 -1.0, %v1574_v3 }
 0x2bc   : > { %v1070_v8 = vsel %vm1006_vm13, %v1946_v29, %v1213_v6 }
 0x2bd   : > { %v1576_v2 = vpop.eup %1575  ;;  %1086 = vst [vmem:[%s1930_s20 + $0x58] sm:$0xff] %v1070_v8  ;;  %v1069_v9 = vsel %vm1005_vm14, %v1950_v33, %v1212_v7 }
 0x2be   : > { %v1578_v10 = vpop.eup %1577  ;;  %1085 = vst [vmem:[%s1930_s20 + $0x50] sm:$0xff] %v1069_v9  ;;  %v1215_v4 = vadd.f32 -1.0, %v1576_v2 }
 0x2bf   : > { %v1214_v11 = vadd.f32 -1.0, %v1578_v10 }
 0x2c0   : > { %v1072_v12 = vsel %vm1008_vm15, %v992_v44, %v1215_v4 }
 0x2c1   : > { %v1580_v13 = vpop.eup %1579  ;;  %1088 = vst [vmem:[%s1930_s20 + $0x68] sm:$0xff] %v1072_v12  ;;  %v1071_v16 = vsel %vm1007_vm0, %v991_v46, %v1214_v11 }
 0x2c2   : > { %v1582_v17 = vpop.eup %1581  ;;  %1087 = vst [vmem:[%s1930_s20 + $0x60] sm:$0xff] %v1071_v16  ;;  %v1217_v18 = vadd.f32 -1.0, %v1580_v13 }
 0x2c3   : > { %v1216_v19 = vadd.f32 -1.0, %v1582_v17 }
 0x2c4   : > { %v1074_v20 = vsel %vm1010_vm1, %v994_v52, %v1217_v18 }
 0x2c5   : > { %1090 = vst [vmem:[%s1930_s20 + $0x78] sm:$0xff] %v1074_v20  ;;  %v1073_v21 = vsel %vm1009_vm2, %v993_v54, %v1216_v19 }
 0x2c6   : > { %1089 = vst [vmem:[%s1930_s20 + $0x70] sm:$0xff] %v1073_v21 }
 0x2c7 PF: > { %s14_s15 = sadd.s32 1, %s1589_s15  }
 0x2c8   : > { %p11_p4 = scmp.ge.s32.totalorder %s14_s15, 6  }
 0x2ca   :  { %13 = sbr.rel (!%p11_p4) target bundleno = 1 (0x1), region = 69 }

</bundles_post_ra>
